<compile_context>
chip_gen: v5e
topology: v5e:2x2
jax: 0.10.0
libtpu: 0.0.40
codegen_flags: <defaults>
</compile_context>

<pallas_src>
import jax
import jax.numpy as jnp
from jax.experimental import pallas as pl
from jax.experimental.pallas import tpu as pltpu


def _round_up(v, m):
    return ((v + m - 1) // m) * m


def _mlp_kernel(x_ref, w1_ref, b1_ref, w2_ref, b2_ref, o_ref):
    # Hidden layer: x @ w1 + b1, ReLU   (MXU matmul, f32 accumulation)
    h = jnp.dot(x_ref[...], w1_ref[...], preferred_element_type=jnp.float32)
    h = jnp.maximum(h + b1_ref[...], 0.0)          # (TB, H) + (1, H), VPU ReLU
    # Output layer: h @ w2 + b2  (unpadded (TB, O) tile written back)
    out = jnp.dot(h, w2_ref[...], preferred_element_type=jnp.float32)
    o_ref[...] = (out + b2_ref[...]).astype(o_ref.dtype)


def net_forward(x, w1, b1, w2, b2, *, block_b=1024, min_pallas_batch=256):
    """Pallas forward pass of Net: relu(x @ w1 + b1) @ w2 + b2."""
    B, F = x.shape
    H = w1.shape[1]
    O = w2.shape[1]

    # Small-batch fast path: for a single-tile grid the kernel launch + DMA
    # setup overhead dwarfs the ~KFLOPs of work and there is nothing to
    # pipeline or shard -- let XLA's fused dots handle it.
    if B < min_pallas_batch:
        return jnp.maximum(x @ w1 + b1, 0.0) @ w2 + b2

    b1_2d = b1.reshape(1, H)
    b2_2d = b2.reshape(1, O)

    # --- Batch tiling.
    #   * big tile to amortize per-step overhead (v5e/v6e),
    #   * but capped so there are >= 2 grid steps (v7x megacore can shard the
    #     "parallel" batch axis across its 2 TensorCores),
    #   * sublane-aligned (f32 needs multiples of 8); pad B up to a tile
    #     multiple rather than shrinking the tile to divide B.
    TB = min(block_b, _round_up(pl.cdiv(B, 2), 8))
    TB = max(8, (TB // 8) * 8)
    n_tiles = pl.cdiv(B, TB)
    Bp = n_tiles * TB
    if Bp != B:
        x_in = jnp.zeros((Bp, F), x.dtype).at[:B].set(x)
    else:
        x_in = x

    # Weights/biases never change across the grid: constant index map +
    # single buffer (no double-buffering slot wasted on them).
    resident = dict(pipeline_mode=pl.Buffered(buffer_count=1))

    out_p = pl.pallas_call(
        _mlp_kernel,
        out_shape=jax.ShapeDtypeStruct((Bp, O), x.dtype),
        grid=(n_tiles,),
        in_specs=[
            pl.BlockSpec((TB, F), lambda i: (i, 0)),              # batch tile of x
            pl.BlockSpec((F, H), lambda i: (0, 0), **resident),   # VMEM-resident weights
            pl.BlockSpec((1, H), lambda i: (0, 0), **resident),
            pl.BlockSpec((H, O), lambda i: (0, 0), **resident),
            pl.BlockSpec((1, O), lambda i: (0, 0), **resident),
        ],
        out_specs=pl.BlockSpec((TB, O), lambda i: (i, 0)),
        compiler_params=pltpu.CompilerParams(
            dimension_semantics=("parallel",),   # v7x: shard batch tiles across TCs
        ),
    )(x_in, w1, b1_2d, w2, b2_2d)

    # Strip batch padding only (output columns are already exactly O wide).
    return out_p[:B]


if __name__ == "__main__":
    # Shapes consistent with Net(n_feature, n_hidden, n_output).
    n_feature, n_hidden, n_output = 16, 32, 4

    key = jax.random.PRNGKey(0)
    kx_big, kx_small, kw1, kb1, kw2, kb2 = jax.random.split(key, 6)

    # Deterministic parameter init (mimics nn.Linear uniform init scale).
    w1 = jax.random.uniform(kw1, (n_feature, n_hidden), jnp.float32,
                            minval=-1.0 / n_feature ** 0.5,
                            maxval=1.0 / n_feature ** 0.5)
    b1 = jax.random.uniform(kb1, (n_hidden,), jnp.float32,
                            minval=-1.0 / n_feature ** 0.5,
                            maxval=1.0 / n_feature ** 0.5)
    w2 = jax.random.uniform(kw2, (n_hidden, n_output), jnp.float32,
                            minval=-1.0 / n_hidden ** 0.5,
                            maxval=1.0 / n_hidden ** 0.5)
    b2 = jax.random.uniform(kb2, (n_output,), jnp.float32,
                            minval=-1.0 / n_hidden ** 0.5,
                            maxval=1.0 / n_hidden ** 0.5)

    def ref_fwd(x):
        return jnp.maximum(x @ w1 + b1, 0.0) @ w2 + b2

    # 1) Batch large enough to take the Pallas path: 2 grid steps (TB=504),
    #    batch deliberately not a multiple of 8 to exercise tail padding.
    big_batch = 1000
    x_big = jax.random.normal(kx_big, (big_batch, n_feature), dtype=jnp.float32)
    out_big = jax.block_until_ready(net_forward(x_big, w1, b1, w2, b2))
    assert out_big.shape == (big_batch, n_output)
    assert jnp.allclose(out_big, ref_fwd(x_big), atol=2e-5, rtol=1e-5)

    # 2) Small batch takes the plain-JAX fast path (same semantics).
    small_batch = 10
    x_small = jax.random.normal(kx_small, (small_batch, n_feature), dtype=jnp.float32)
    out_small = jax.block_until_ready(net_forward(x_small, w1, b1, w2, b2))
    assert out_small.shape == (small_batch, n_output)
    assert jnp.allclose(out_small, ref_fwd(x_small), atol=2e-5, rtol=1e-5)

    print("KERNEL_OK")
</pallas_src>

<mosaic_0001>
module attributes {stable_mosaic.version = 11 : i64} {
  func.func @_mlp_kernel(%arg0: i32, %arg1: memref<504x16xf32, #tpu.memory_space<vmem>>, %arg2: memref<16x32xf32, #tpu.memory_space<vmem>>, %arg3: memref<1x32xf32, #tpu.memory_space<vmem>>, %arg4: memref<32x4xf32, #tpu.memory_space<vmem>>, %arg5: memref<1x4xf32, #tpu.memory_space<vmem>>, %arg6: memref<504x4xf32, #tpu.memory_space<vmem>>) attributes {dimension_semantics = [#tpu.dimension_semantics<parallel>], iteration_bounds = array<i64: 2>, scalar_prefetch = 0 : i64, scratch_operands = 0 : i64, tpu.core_type = #tpu.core_type<tc>, window_params = [{transform_indices = @transform_0, window_bounds = array<i64: 504, 16>}, {pipeline_mode = #tpu.pipeline_mode<synchronous>, transform_indices = @transform_1, window_bounds = array<i64: 16, 32>}, {pipeline_mode = #tpu.pipeline_mode<synchronous>, transform_indices = @transform_2, window_bounds = array<i64: 1, 32>}, {pipeline_mode = #tpu.pipeline_mode<synchronous>, transform_indices = @transform_3, window_bounds = array<i64: 32, 4>}, {pipeline_mode = #tpu.pipeline_mode<synchronous>, transform_indices = @transform_4, window_bounds = array<i64: 1, 4>}, {transform_indices = @transform_5, window_bounds = array<i64: 504, 4>}]} {
    %c0 = arith.constant 0 : index
    %c0_0 = arith.constant 0 : index
    %0 = vector.load %arg1[%c0, %c0_0] : memref<504x16xf32, #tpu.memory_space<vmem>>, vector<504x16xf32>
    %c0_1 = arith.constant 0 : index
    %c0_2 = arith.constant 0 : index
    %1 = vector.load %arg2[%c0_1, %c0_2] : memref<16x32xf32, #tpu.memory_space<vmem>>, vector<16x32xf32>
    %cst = arith.constant dense<0.000000e+00> : vector<504x32xf32>
    %2 = tpu.matmul %0, %1, %cst {dimension_numbers = #tpu.dot_dimension_numbers<[1], [0], [0], [1], [0, 0, 1, 1], [], []>} : vector<504x16xf32>, vector<16x32xf32>, vector<504x32xf32> -> vector<504x32xf32>
    %c0_3 = arith.constant 0 : index
    %c0_4 = arith.constant 0 : index
    %3 = vector.load %arg3[%c0_3, %c0_4] : memref<1x32xf32, #tpu.memory_space<vmem>>, vector<1x32xf32>
    %4 = vector.broadcast %3 : vector<1x32xf32> to vector<504x32xf32>
    %5 = arith.addf %2, %4 : vector<504x32xf32>
    %cst_5 = arith.constant 0.000000e+00 : f32
    %6 = vector.broadcast %cst_5 : f32 to vector<504x32xf32>
    %7 = arith.maximumf %5, %6 : vector<504x32xf32>
    %c0_6 = arith.constant 0 : index
    %c0_7 = arith.constant 0 : index
    %8 = vector.load %arg4[%c0_6, %c0_7] : memref<32x4xf32, #tpu.memory_space<vmem>>, vector<32x4xf32>
    %cst_8 = arith.constant dense<0.000000e+00> : vector<504x4xf32>
    %9 = tpu.matmul %7, %8, %cst_8 {dimension_numbers = #tpu.dot_dimension_numbers<[1], [0], [0], [1], [0, 0, 1, 1], [], []>} : vector<504x32xf32>, vector<32x4xf32>, vector<504x4xf32> -> vector<504x4xf32>
    %c0_9 = arith.constant 0 : index
    %c0_10 = arith.constant 0 : index
    %10 = vector.load %arg5[%c0_9, %c0_10] : memref<1x4xf32, #tpu.memory_space<vmem>>, vector<1x4xf32>
    %11 = vector.broadcast %10 : vector<1x4xf32> to vector<504x4xf32>
    %12 = arith.addf %9, %11 : vector<504x4xf32>
    %c0_11 = arith.constant 0 : index
    %c0_12 = arith.constant 0 : index
    %13 = vector.load %arg6[%c0_11, %c0_12] : memref<504x4xf32, #tpu.memory_space<vmem>>, vector<504x4xf32>
    tpu.vector_store %arg6[%c0_11, %c0_12], %12 {strides = array<i32>} : memref<504x4xf32, #tpu.memory_space<vmem>>, vector<504x4xf32>,
    return
  }
  func.func @transform_0(%arg0: i32) -> (i32, i32) {
    %c0_i32 = arith.constant 0 : i32
    %c0_i32_0 = arith.constant 0 : i32
    return %arg0, %c0_i32 : i32, i32
  }
  func.func @transform_1(%arg0: i32) -> (i32, i32) {
    %c0_i32 = arith.constant 0 : i32
    %c0_i32_0 = arith.constant 0 : i32
    %c0_i32_1 = arith.constant 0 : i32
    return %c0_i32, %c0_i32_0 : i32, i32
  }
  func.func @transform_2(%arg0: i32) -> (i32, i32) {
    %c0_i32 = arith.constant 0 : i32
    %c0_i32_0 = arith.constant 0 : i32
    %c0_i32_1 = arith.constant 0 : i32
    return %c0_i32, %c0_i32_0 : i32, i32
  }
  func.func @transform_3(%arg0: i32) -> (i32, i32) {
    %c0_i32 = arith.constant 0 : i32
    %c0_i32_0 = arith.constant 0 : i32
    %c0_i32_1 = arith.constant 0 : i32
    return %c0_i32, %c0_i32_0 : i32, i32
  }
  func.func @transform_4(%arg0: i32) -> (i32, i32) {
    %c0_i32 = arith.constant 0 : i32
    %c0_i32_0 = arith.constant 0 : i32
    %c0_i32_1 = arith.constant 0 : i32
    return %c0_i32, %c0_i32_0 : i32, i32
  }
  func.func @transform_5(%arg0: i32) -> (i32, i32) {
    %c0_i32 = arith.constant 0 : i32
    %c0_i32_0 = arith.constant 0 : i32
    return %arg0, %c0_i32 : i32, i32
  }
}

</mosaic_0001>

<bundles_post_ra>
// kernel: tpu_custom_call.1
= control target key start
LH: loop header
LB: loop body
LE: loop exit
PB: predicated region body
PF: predicated region fallthrough
CT: control target
= control target key end

     0   :  { %s1469_s18 = smov 0   ;;  %s1966_s0 = inlined_call_operand.vmem [shape: f32[1008,16], index: 0, kind: input, shape index: {}]   ;;  %s1967_s1 = inlined_call_operand.vmem [shape: f32[16,32], index: 1, kind: input, shape index: {}]   ;;  %s1968_s2 = inlined_call_operand.vmem [shape: f32[1,32], index: 2, kind: input, shape index: {}]   ;;  %s1969_s3 = inlined_call_operand.vmem [shape: f32[32,4], index: 3, kind: input, shape index: {}]   ;;  %s1970_s4 = inlined_call_operand.vmem [shape: f32[1,4], index: 4, kind: input, shape index: {}]   ;;  %s1971_s5 = inlined_call_operand.vmem [shape: f32[1008,4], index: 5, kind: output, shape index: {}]  }
   0x1 LB: > { %s1280_s19 = sadd.s32 4294967295, %s1437_s18   ;;  %p1284_p0 = scmp.ge.s32.totalorder %s1437_s18, 1  ;;  %s1437_s18 = sphi %s1469_s18, %s15_s18  }
   0x2   : > { %p188_p1 = scmp.lt.s32.totalorder %s1437_s18, 3 }
   0x4   : > { %p189_p2 = pnand %p1284_p0, %p188_p1 }
   0x5   : > { %s216_s24 = smul.u32 (!%p189_p2), 63, %s1280_s19 }
   0x6   : > { %192 = sbr.rel (%p189_p2) target bundleno = 526 (0x20e), region = 40 }
   0x7   : > { %p217_p3 = scmp.lt.s32.totalorder (!%p189_p2), %s216_s24, 125 }
   0xb   : > { %v292_v0 = vld [vmem:[%s1967_s1 + $0x8] sm:$0xff]  ;;  %v291_v1 = vld [vmem:[%s1967_s1] sm:$0xff]  ;;  %s1973_s24 = smov (!%p217_p3, %s216_s24), 125  ;;  %vm297_vm0 = vcmask 130048   ;;  %v759_v26 = vld [vmem:[%s1969_s3 + $0x18] sm:$0xff]  ;;  %vm764_vm1 = vcmask 261120  }
   0xc   : > { %1415 = vmatpush.msra.mxu3 %v292_v0  ;;  %501 = vmatpush.msra.mxu0 %v292_v0  ;;  %s1285_s25 = sshll.u32 %s1973_s24, 3  ;;  %v758_v29 = vld [vmem:[%s1969_s3 + $0x10] sm:$0xff]  ;;  %v757_v30 = vld [vmem:[%s1969_s3 + $0x8] sm:$0xff]  ;;  %v756_v31 = vld [vmem:[%s1969_s3] sm:$0xff]  ;;  %vm1160_vm2 = vcmask 31744  }
   0xd   : > { %s1491_s28 = scalar_lea.vmem %s1966_s0, %s1285_s25  ;;  %966 = vmatpush.msra.mxu1 %v759_v26  ;;  %1417 = vmatpush.msra.mxu2 %v759_v26  ;;  %v1572_v38 = vld [vmem:[%s1968_s2] ss:$0 sm:$0xff]  ;;  %s1710_s19 = scalar_lea.vmem %s1971_s5, %s1285_s25 }
   0xe   : > { %1416 = vmatpush.msra.mxu3 %v291_v1  ;;  %502 = vmatpush.msra.mxu0 %v291_v1  ;;  %v260_v2 = vld [vmem:[%s1491_s28 + $0x100] sm:$0xff]  ;;  %v261_v4 = vld [vmem:[%s1491_s28 + $0x108] sm:$0xff]  ;;  %v262_v6 = vld [vmem:[%s1491_s28 + $0x110] sm:$0xff] }
   0xf   : > { %v228_v3 = vld [vmem:[%s1491_s28] sm:$0xff]  ;;  %1319 = vmatmul.msk.f32.vlgmr.msra.gmra.mxu3 %vm297_vm0, %v260_v2  ;;  %v229_v5 = vld [vmem:[%s1491_s28 + $0x8] sm:$0xff]  ;;  %v230_v7 = vld [vmem:[%s1491_s28 + $0x10] sm:$0xff]  ;;  %967 = vmatpush.msra.mxu1 %v758_v29 }
  0x10   : > { %1287 = vmatmul.msk.f32.vlgmr.msra.gmra.mxu0 %vm297_vm0, %v228_v3  ;;  %v263_v8 = vld [vmem:[%s1491_s28 + $0x118] sm:$0xff]  ;;  %v264_v10 = vld [vmem:[%s1491_s28 + $0x120] sm:$0xff]  ;;  %v265_v12 = vld [vmem:[%s1491_s28 + $0x128] sm:$0xff]  ;;  %1418 = vmatpush.msra.mxu2 %v758_v29 }
  0x11   : > { %v231_v9 = vld [vmem:[%s1491_s28 + $0x18] sm:$0xff]  ;;  %v232_v11 = vld [vmem:[%s1491_s28 + $0x20] sm:$0xff]  ;;  %v233_v13 = vld [vmem:[%s1491_s28 + $0x28] sm:$0xff]  ;;  %968 = vmatpush.msra.mxu1 %v757_v30 }
  0x12   : > { %v266_v14 = vld [vmem:[%s1491_s28 + $0x130] sm:$0xff]  ;;  %v267_v16 = vld [vmem:[%s1491_s28 + $0x138] sm:$0xff]  ;;  %v268_v18 = vld [vmem:[%s1491_s28 + $0x140] sm:$0xff]  ;;  %1419 = vmatpush.msra.mxu2 %v757_v30 }
  0x13   : > { %v234_v15 = vld [vmem:[%s1491_s28 + $0x30] sm:$0xff]  ;;  %v235_v17 = vld [vmem:[%s1491_s28 + $0x38] sm:$0xff]  ;;  %v236_v19 = vld [vmem:[%s1491_s28 + $0x40] sm:$0xff]  ;;  %969 = vmatpush.msra.mxu1 %v756_v31 }
  0x14   : > { %v269_v20 = vld [vmem:[%s1491_s28 + $0x148] sm:$0xff]  ;;  %v270_v22 = vld [vmem:[%s1491_s28 + $0x150] sm:$0xff]  ;;  %v271_v24 = vld [vmem:[%s1491_s28 + $0x158] sm:$0xff]  ;;  %1420 = vmatpush.msra.mxu2 %v756_v31 }
  0x15   : > { %v237_v21 = vld [vmem:[%s1491_s28 + $0x48] sm:$0xff]  ;;  %v238_v23 = vld [vmem:[%s1491_s28 + $0x50] sm:$0xff]  ;;  %v239_v25 = vld [vmem:[%s1491_s28 + $0x58] sm:$0xff] }
  0x16   : > { %v272_v27 = vld [vmem:[%s1491_s28 + $0x160] sm:$0xff]  ;;  %v273_v32 = vld [vmem:[%s1491_s28 + $0x168] sm:$0xff]  ;;  %v274_v34 = vld [vmem:[%s1491_s28 + $0x170] sm:$0xff] }
  0x17   : > { %1320 = vmatmul.msk.f32.gmra.mxu3 %vm297_vm0, %v261_v4  ;;  %v240_v28 = vld [vmem:[%s1491_s28 + $0x60] sm:$0xff]  ;;  %v241_v33 = vld [vmem:[%s1491_s28 + $0x68] sm:$0xff]  ;;  %v242_v35 = vld [vmem:[%s1491_s28 + $0x70] sm:$0xff] }
  0x18   : > { %1288 = vmatmul.msk.f32.gmra.mxu0 %vm297_vm0, %v229_v5  ;;  %v275_v36 = vld [vmem:[%s1491_s28 + $0x178] sm:$0xff]  ;;  %v276_v39 = vld [vmem:[%s1491_s28 + $0x180] sm:$0xff]  ;;  %v277_v46 = vld [vmem:[%s1491_s28 + $0x188] sm:$0xff] }
  0x19   : > { %v243_v37 = vld [vmem:[%s1491_s28 + $0x78] sm:$0xff]  ;;  %v244_v41 = vld [vmem:[%s1491_s28 + $0x80] sm:$0xff]  ;;  %v245_v50 = vld [vmem:[%s1491_s28 + $0x88] sm:$0xff] }
  0x1a   : > { %v278_v54 = vld [vmem:[%s1491_s28 + $0x190] sm:$0xff]  ;;  %v279_v62 = vld [vmem:[%s1491_s28 + $0x198] sm:$0xff] }
  0x1b   : > { %v246_v58 = vld [vmem:[%s1491_s28 + $0x90] sm:$0xff]  ;;  %v247_v2 = vld [vmem:[%s1491_s28 + $0x98] sm:$0xff] }
  0x1c   : > { %v250_v26 = vld [vmem:[%s1491_s28 + $0xb0] sm:$0xff]  ;;  %v283_v30 = vld [vmem:[%s1491_s28 + $0x1b8] sm:$0xff] }
  0x1f   : > { %1321 = vmatmul.msk.f32.gmra.mxu3 %vm297_vm0, %v262_v6  ;;  %v280_v6 = vld [vmem:[%s1491_s28 + $0x1a0] sm:$0xff] }
  0x20   : > { %1289 = vmatmul.msk.f32.gmra.mxu0 %vm297_vm0, %v230_v7 }
  0x27   : > { %1322 = vmatmul.msk.f32.gmra.mxu3 %vm297_vm0, %v263_v8 }
  0x28   : > { %1290 = vmatmul.msk.f32.gmra.mxu0 %vm297_vm0, %v231_v9 }
  0x2f   : > { %1323 = vmatmul.msk.f32.gmra.mxu3 %vm297_vm0, %v264_v10  ;;  %v248_v10 = vld [vmem:[%s1491_s28 + $0xa0] sm:$0xff] }
  0x30   : > { %1291 = vmatmul.msk.f32.gmra.mxu0 %vm297_vm0, %v232_v11 }
  0x37   : > { %1324 = vmatmul.msk.f32.gmra.mxu3 %vm297_vm0, %v265_v12 }
  0x38   : > { %1292 = vmatmul.msk.f32.gmra.mxu0 %vm297_vm0, %v233_v13 }
  0x3f   : > { %1325 = vmatmul.msk.f32.gmra.mxu3 %vm297_vm0, %v266_v14  ;;  %v281_v14 = vld [vmem:[%s1491_s28 + $0x1a8] sm:$0xff] }
  0x40   : > { %1293 = vmatmul.msk.f32.gmra.mxu0 %vm297_vm0, %v234_v15 }
  0x47   : > { %1326 = vmatmul.msk.f32.gmra.mxu3 %vm297_vm0, %v267_v16 }
  0x48   : > { %1294 = vmatmul.msk.f32.gmra.mxu0 %vm297_vm0, %v235_v17 }
  0x4f   : > { %1327 = vmatmul.msk.f32.gmra.mxu3 %vm297_vm0, %v268_v18  ;;  %v249_v18 = vld [vmem:[%s1491_s28 + $0xa8] sm:$0xff] }
  0x50   : > { %1295 = vmatmul.msk.f32.gmra.mxu0 %vm297_vm0, %v236_v19 }
  0x57   : > { %1328 = vmatmul.msk.f32.gmra.mxu3 %vm297_vm0, %v269_v20 }
  0x58   : > { %1296 = vmatmul.msk.f32.gmra.mxu0 %vm297_vm0, %v237_v21 }
  0x5f   : > { %1329 = vmatmul.msk.f32.gmra.mxu3 %vm297_vm0, %v270_v22  ;;  %v282_v22 = vld [vmem:[%s1491_s28 + $0x1b0] sm:$0xff] }
  0x60   : > { %1297 = vmatmul.msk.f32.gmra.mxu0 %vm297_vm0, %v238_v23 }
  0x67   : > { %1330 = vmatmul.msk.f32.gmra.mxu3 %vm297_vm0, %v271_v24 }
  0x68   : > { %1298 = vmatmul.msk.f32.gmra.mxu0 %vm297_vm0, %v239_v25 }
  0x6f   : > { %1331 = vmatmul.msk.f32.gmra.mxu3 %vm297_vm0, %v272_v27 }
  0x70   : > { %1299 = vmatmul.msk.f32.gmra.mxu0 %vm297_vm0, %v240_v28 }
  0x77   : > { %1332 = vmatmul.msk.f32.gmra.mxu3 %vm297_vm0, %v273_v32 }
  0x78   : > { %1300 = vmatmul.msk.f32.gmra.mxu0 %vm297_vm0, %v241_v33 }
  0x7f   : > { %1333 = vmatmul.msk.f32.gmra.mxu3 %vm297_vm0, %v274_v34  ;;  %v251_v34 = vld [vmem:[%s1491_s28 + $0xb8] sm:$0xff] }
  0x80   : > { %1301 = vmatmul.msk.f32.gmra.mxu0 %vm297_vm0, %v242_v35 }
  0x87   : > { %1334 = vmatmul.msk.f32.gmra.mxu3 %vm297_vm0, %v275_v36 }
  0x88   : > { %1302 = vmatmul.msk.f32.gmra.mxu0 %vm297_vm0, %v243_v37 }
  0x8d   : > { %v504_v40 = vpop.f32.mrf.mxu0 }
  0x8e   : > { %v505_v42 = vadd.f32 %v1572_v38, %v504_v40 }
  0x8f   : > { %1335 = vmatmul.msk.f32.gmra.mxu3 %vm297_vm0, %v276_v39  ;;  %v284_v39 = vld [vmem:[%s1491_s28 + $0x1c0] sm:$0xff] }
  0x90   : > { %v693_v43 = vmax.f32 %v505_v42, 0.0  ;;  %1303 = vmatmul.msk.f32.gmra.mxu0 %vm297_vm0, %v244_v41 }
  0x92   : > { %1350 = vmatmul.msk.f32.vlgmr.msra.gmra.mxu1 %vm764_vm1, %v693_v43  ;;  %v600_v44 = vpop.f32.mrf.mxu3  ;;  %v252_v43 = vld [vmem:[%s1491_s28 + $0xc0] sm:$0xff] }
  0x93   : > { %v601_v45 = vadd.f32 %v1572_v38, %v600_v44 }
  0x95   : > { %v507_v47 = vpop.f32.mrf.mxu0  ;;  %v725_v48 = vmax.f32 %v601_v45, 0.0 }
  0x96   : > { %v508_v49 = vadd.f32 %v1572_v38, %v507_v47  ;;  %v285_v47 = vld [vmem:[%s1491_s28 + $0x1c8] sm:$0xff] }
  0x97   : > { %1336 = vmatmul.msk.f32.gmra.mxu3 %vm297_vm0, %v277_v46  ;;  %1382 = vmatmul.msk.f32.vlgmr.msra.gmra.mxu2 %vm764_vm1, %v725_v48 }
  0x98   : > { %v694_v51 = vmax.f32 %v508_v49, 0.0  ;;  %1304 = vmatmul.msk.f32.gmra.mxu0 %vm297_vm0, %v245_v50 }
  0x9a   : > { %1351 = vmatmul.msk.f32.gmra.mxu1 %vm764_vm1, %v694_v51  ;;  %v603_v52 = vpop.f32.mrf.mxu3  ;;  %v253_v51 = vld [vmem:[%s1491_s28 + $0xc8] sm:$0xff] }
  0x9b   : > { %v604_v53 = vadd.f32 %v1572_v38, %v603_v52 }
  0x9d   : > { %v510_v55 = vpop.f32.mrf.mxu0  ;;  %v726_v56 = vmax.f32 %v604_v53, 0.0 }
  0x9e   : > { %v511_v57 = vadd.f32 %v1572_v38, %v510_v55  ;;  %v286_v55 = vld [vmem:[%s1491_s28 + $0x1d0] sm:$0xff] }
  0x9f   : > { %1337 = vmatmul.msk.f32.gmra.mxu3 %vm297_vm0, %v278_v54  ;;  %1383 = vmatmul.msk.f32.gmra.mxu2 %vm764_vm1, %v726_v56 }
  0xa0   : > { %v695_v59 = vmax.f32 %v511_v57, 0.0  ;;  %1305 = vmatmul.msk.f32.gmra.mxu0 %vm297_vm0, %v246_v58 }
  0xa2   : > { %1352 = vmatmul.msk.f32.gmra.mxu1 %vm764_vm1, %v695_v59  ;;  %v606_v60 = vpop.f32.mrf.mxu3  ;;  %v254_v59 = vld [vmem:[%s1491_s28 + $0xd0] sm:$0xff] }
  0xa3   : > { %v607_v61 = vadd.f32 %v1572_v38, %v606_v60 }
  0xa5   : > { %v513_v63 = vpop.f32.mrf.mxu0  ;;  %v727_v0 = vmax.f32 %v607_v61, 0.0 }
  0xa6   : > { %v514_v1 = vadd.f32 %v1572_v38, %v513_v63  ;;  %v287_v63 = vld [vmem:[%s1491_s28 + $0x1d8] sm:$0xff] }
  0xa7   : > { %1338 = vmatmul.msk.f32.gmra.mxu3 %vm297_vm0, %v279_v62  ;;  %1384 = vmatmul.msk.f32.gmra.mxu2 %vm764_vm1, %v727_v0 }
  0xa8   : > { %v696_v3 = vmax.f32 %v514_v1, 0.0  ;;  %1306 = vmatmul.msk.f32.gmra.mxu0 %vm297_vm0, %v247_v2 }
  0xaa   : > { %1353 = vmatmul.msk.f32.gmra.mxu1 %vm764_vm1, %v696_v3  ;;  %v609_v4 = vpop.f32.mrf.mxu3  ;;  %v255_v3 = vld [vmem:[%s1491_s28 + $0xd8] sm:$0xff] }
  0xab   : > { %v610_v5 = vadd.f32 %v1572_v38, %v609_v4 }
  0xad   : > { %v516_v7 = vpop.f32.mrf.mxu0  ;;  %v728_v8 = vmax.f32 %v610_v5, 0.0 }
  0xae   : > { %v517_v9 = vadd.f32 %v1572_v38, %v516_v7  ;;  %v288_v7 = vld [vmem:[%s1491_s28 + $0x1e0] sm:$0xff] }
  0xaf   : > { %1339 = vmatmul.msk.f32.gmra.mxu3 %vm297_vm0, %v280_v6  ;;  %1385 = vmatmul.msk.f32.gmra.mxu2 %vm764_vm1, %v728_v8 }
  0xb0   : > { %v697_v11 = vmax.f32 %v517_v9, 0.0  ;;  %1307 = vmatmul.msk.f32.gmra.mxu0 %vm297_vm0, %v248_v10 }
  0xb2   : > { %1354 = vmatmul.msk.f32.gmra.mxu1 %vm764_vm1, %v697_v11  ;;  %v612_v12 = vpop.f32.mrf.mxu3  ;;  %v256_v11 = vld [vmem:[%s1491_s28 + $0xe0] sm:$0xff] }
  0xb3   : > { %v613_v13 = vadd.f32 %v1572_v38, %v612_v12 }
  0xb5   : > { %v519_v15 = vpop.f32.mrf.mxu0  ;;  %v729_v16 = vmax.f32 %v613_v13, 0.0 }
  0xb6   : > { %v520_v17 = vadd.f32 %v1572_v38, %v519_v15  ;;  %v289_v15 = vld [vmem:[%s1491_s28 + $0x1e8] sm:$0xff] }
  0xb7   : > { %1340 = vmatmul.msk.f32.gmra.mxu3 %vm297_vm0, %v281_v14  ;;  %1386 = vmatmul.msk.f32.gmra.mxu2 %vm764_vm1, %v729_v16 }
  0xb8   : > { %v698_v19 = vmax.f32 %v520_v17, 0.0  ;;  %1308 = vmatmul.msk.f32.gmra.mxu0 %vm297_vm0, %v249_v18 }
  0xba   : > { %1355 = vmatmul.msk.f32.gmra.mxu1 %vm764_vm1, %v698_v19  ;;  %v615_v20 = vpop.f32.mrf.mxu3  ;;  %v257_v19 = vld [vmem:[%s1491_s28 + $0xe8] sm:$0xff] }
  0xbb   : > { %v616_v21 = vadd.f32 %v1572_v38, %v615_v20 }
  0xbd   : > { %v522_v23 = vpop.f32.mrf.mxu0  ;;  %v730_v24 = vmax.f32 %v616_v21, 0.0 }
  0xbe   : > { %v523_v25 = vadd.f32 %v1572_v38, %v522_v23  ;;  %v290_v23 = vld [vmem:[%s1491_s28 + $0x1f0] sm:$0xff] }
  0xbf   : > { %1341 = vmatmul.msk.f32.gmra.mxu3 %vm297_vm0, %v282_v22  ;;  %1387 = vmatmul.msk.f32.gmra.mxu2 %vm764_vm1, %v730_v24 }
  0xc0   : > { %v699_v27 = vmax.f32 %v523_v25, 0.0  ;;  %1309 = vmatmul.msk.f32.gmra.mxu0 %vm297_vm0, %v250_v26 }
  0xc2   : > { %1356 = vmatmul.msk.f32.gmra.mxu1 %vm764_vm1, %v699_v27  ;;  %v618_v28 = vpop.f32.mrf.mxu3  ;;  %v258_v27 = vld [vmem:[%s1491_s28 + $0xf0] sm:$0xff] }
  0xc3   : > { %v619_v29 = vadd.f32 %v1572_v38, %v618_v28 }
  0xc5   : > { %v525_v31 = vpop.f32.mrf.mxu0  ;;  %v731_v32 = vmax.f32 %v619_v29, 0.0 }
  0xc6   : > { %v526_v33 = vadd.f32 %v1572_v38, %v525_v31 }
  0xc7   : > { %1342 = vmatmul.msk.f32.gmra.mxu3 %vm297_vm0, %v283_v30  ;;  %1388 = vmatmul.msk.f32.gmra.mxu2 %vm764_vm1, %v731_v32 }
  0xc8   : > { %v700_v35 = vmax.f32 %v526_v33, 0.0  ;;  %1310 = vmatmul.msk.f32.gmra.mxu0 %vm297_vm0, %v251_v34  ;;  %v259_v34 = vld [vmem:[%s1491_s28 + $0xf8] sm:$0xff] }
  0xca   : > { %1357 = vmatmul.msk.f32.gmra.mxu1 %vm764_vm1, %v700_v35  ;;  %v621_v36 = vpop.f32.mrf.mxu3 }
  0xcb   : > { %v622_v37 = vadd.f32 %v1572_v38, %v621_v36 }
  0xcd   : > { %v528_v40 = vpop.f32.mrf.mxu0  ;;  %v732_v41 = vmax.f32 %v622_v37, 0.0 }
  0xce   : > { %v529_v42 = vadd.f32 %v1572_v38, %v528_v40 }
  0xcf   : > { %1343 = vmatmul.msk.f32.gmra.mxu3 %vm297_vm0, %v284_v39  ;;  %1389 = vmatmul.msk.f32.gmra.mxu2 %vm764_vm1, %v732_v41  ;;  %v1702_v39 = vld [vmem:[%s1970_s4] ss:$0 sm:$0xff] }
  0xd0   : > { %v701_v44 = vmax.f32 %v529_v42, 0.0  ;;  %1311 = vmatmul.msk.f32.gmra.mxu0 %vm297_vm0, %v252_v43 }
  0xd2   : > { %1358 = vmatmul.msk.f32.gmra.mxu1 %vm764_vm1, %v701_v44  ;;  %v624_v45 = vpop.f32.mrf.mxu3 }
  0xd3   : > { %v625_v46 = vadd.f32 %v1572_v38, %v624_v45 }
  0xd5   : > { %v531_v48 = vpop.f32.mrf.mxu0  ;;  %v733_v49 = vmax.f32 %v625_v46, 0.0 }
  0xd6   : > { %v532_v50 = vadd.f32 %v1572_v38, %v531_v48 }
  0xd7   : > { %1344 = vmatmul.msk.f32.gmra.mxu3 %vm297_vm0, %v285_v47  ;;  %1390 = vmatmul.msk.f32.gmra.mxu2 %vm764_vm1, %v733_v49 }
  0xd8   : > { %v702_v52 = vmax.f32 %v532_v50, 0.0  ;;  %1312 = vmatmul.msk.f32.gmra.mxu0 %vm297_vm0, %v253_v51 }
  0xda   : > { %1359 = vmatmul.msk.f32.gmra.mxu1 %vm764_vm1, %v702_v52  ;;  %v627_v53 = vpop.f32.mrf.mxu3 }
  0xdb   : > { %v628_v54 = vadd.f32 %v1572_v38, %v627_v53 }
  0xdd   : > { %v534_v56 = vpop.f32.mrf.mxu0  ;;  %v734_v57 = vmax.f32 %v628_v54, 0.0 }
  0xde   : > { %v535_v58 = vadd.f32 %v1572_v38, %v534_v56 }
  0xdf   : > { %1345 = vmatmul.msk.f32.gmra.mxu3 %vm297_vm0, %v286_v55  ;;  %1391 = vmatmul.msk.f32.gmra.mxu2 %vm764_vm1, %v734_v57 }
  0xe0   : > { %v703_v60 = vmax.f32 %v535_v58, 0.0  ;;  %1313 = vmatmul.msk.f32.gmra.mxu0 %vm297_vm0, %v254_v59 }
  0xe2   : > { %1360 = vmatmul.msk.f32.gmra.mxu1 %vm764_vm1, %v703_v60  ;;  %v630_v61 = vpop.f32.mrf.mxu3 }
  0xe3   : > { %v631_v62 = vadd.f32 %v1572_v38, %v630_v61 }
  0xe5   : > { %v537_v0 = vpop.f32.mrf.mxu0  ;;  %v735_v1 = vmax.f32 %v631_v62, 0.0 }
  0xe6   : > { %v538_v2 = vadd.f32 %v1572_v38, %v537_v0 }
  0xe7   : > { %1346 = vmatmul.msk.f32.gmra.mxu3 %vm297_vm0, %v287_v63  ;;  %1392 = vmatmul.msk.f32.gmra.mxu2 %vm764_vm1, %v735_v1 }
  0xe8   : > { %v704_v4 = vmax.f32 %v538_v2, 0.0  ;;  %1314 = vmatmul.msk.f32.gmra.mxu0 %vm297_vm0, %v255_v3 }
  0xea   : > { %1361 = vmatmul.msk.f32.gmra.mxu1 %vm764_vm1, %v704_v4  ;;  %v633_v5 = vpop.f32.mrf.mxu3 }
  0xeb   : > { %v634_v6 = vadd.f32 %v1572_v38, %v633_v5 }
  0xed   : > { %v540_v8 = vpop.f32.mrf.mxu0  ;;  %v736_v9 = vmax.f32 %v634_v6, 0.0 }
  0xee   : > { %v541_v10 = vadd.f32 %v1572_v38, %v540_v8 }
  0xef   : > { %1347 = vmatmul.msk.f32.gmra.mxu3 %vm297_vm0, %v288_v7  ;;  %1393 = vmatmul.msk.f32.gmra.mxu2 %vm764_vm1, %v736_v9 }
  0xf0   : > { %v705_v12 = vmax.f32 %v541_v10, 0.0  ;;  %1315 = vmatmul.msk.f32.gmra.mxu0 %vm297_vm0, %v256_v11 }
  0xf2   : > { %1362 = vmatmul.msk.f32.gmra.mxu1 %vm764_vm1, %v705_v12  ;;  %v636_v13 = vpop.f32.mrf.mxu3 }
  0xf3   : > { %v637_v14 = vadd.f32 %v1572_v38, %v636_v13 }
  0xf5   : > { %v543_v16 = vpop.f32.mrf.mxu0  ;;  %v737_v17 = vmax.f32 %v637_v14, 0.0 }
  0xf6   : > { %v544_v18 = vadd.f32 %v1572_v38, %v543_v16 }
  0xf7   : > { %1348 = vmatmul.msk.f32.gmra.mxu3 %vm297_vm0, %v289_v15  ;;  %1394 = vmatmul.msk.f32.gmra.mxu2 %vm764_vm1, %v737_v17 }
  0xf8   : > { %v706_v20 = vmax.f32 %v544_v18, 0.0  ;;  %1316 = vmatmul.msk.f32.gmra.mxu0 %vm297_vm0, %v257_v19 }
  0xfa   : > { %1363 = vmatmul.msk.f32.gmra.mxu1 %vm764_vm1, %v706_v20  ;;  %v639_v21 = vpop.f32.mrf.mxu3 }
  0xfb   : > { %v640_v22 = vadd.f32 %v1572_v38, %v639_v21 }
  0xfd   : > { %v546_v24 = vpop.f32.mrf.mxu0  ;;  %v738_v25 = vmax.f32 %v640_v22, 0.0 }
  0xfe   : > { %v547_v26 = vadd.f32 %v1572_v38, %v546_v24 }
  0xff   : > { %1349 = vmatmul.msk.f32.gmra.mxu3 %vm297_vm0, %v290_v23  ;;  %1395 = vmatmul.msk.f32.gmra.mxu2 %vm764_vm1, %v738_v25 }
 0x100   : > { %v707_v28 = vmax.f32 %v547_v26, 0.0  ;;  %1317 = vmatmul.msk.f32.gmra.mxu0 %vm297_vm0, %v258_v27 }
 0x102   : > { %1364 = vmatmul.msk.f32.gmra.mxu1 %vm764_vm1, %v707_v28  ;;  %v642_v29 = vpop.f32.mrf.mxu3 }
 0x103   : > { %v643_v30 = vadd.f32 %v1572_v38, %v642_v29 }
 0x105   : > { %v549_v31 = vpop.f32.mrf.mxu0  ;;  %v739_v32 = vmax.f32 %v643_v30, 0.0 }
 0x106   : > { %v550_v33 = vadd.f32 %v1572_v38, %v549_v31 }
 0x107   : > { %1396 = vmatmul.msk.f32.gmra.mxu2 %vm764_vm1, %v739_v32 }
 0x108   : > { %v708_v35 = vmax.f32 %v550_v33, 0.0  ;;  %1318 = vmatmul.msk.f32.gmra.mxu0 %vm297_vm0, %v259_v34 }
 0x10a   : > { %1365 = vmatmul.msk.f32.gmra.mxu1 %vm764_vm1, %v708_v35  ;;  %v645_v36 = vpop.f32.mrf.mxu3 }
 0x10b   : > { %v646_v37 = vadd.f32 %v1572_v38, %v645_v36 }
 0x10d   : > { %v552_v40 = vpop.f32.mrf.mxu0  ;;  %v740_v41 = vmax.f32 %v646_v37, 0.0 }
 0x10e   : > { %v553_v42 = vadd.f32 %v1572_v38, %v552_v40 }
 0x10f   : > { %v971_v43 = vpop.f32.mrf.mxu1  ;;  %1397 = vmatmul.msk.f32.gmra.mxu2 %vm764_vm1, %v740_v41 }
 0x110   : > { %v709_v44 = vmax.f32 %v553_v42, 0.0  ;;  %v972_v45 = vadd.f32 %v1702_v39, %v971_v43 }
 0x112   : > { %1161 = vst.msk [vmem:[%s1710_s19] sm:$0xff] %vm1160_vm2, %v972_v45  ;;  %1366 = vmatmul.msk.f32.gmra.mxu1 %vm764_vm1, %v709_v44  ;;  %v648_v46 = vpop.f32.mrf.mxu3 }
 0x113   : > { %v649_v47 = vadd.f32 %v1572_v38, %v648_v46 }
 0x115   : > { %v741_v48 = vmax.f32 %v649_v47, 0.0  ;;  %v555_v49 = vpop.f32.mrf.mxu0 }
 0x116   : > { %v556_v50 = vadd.f32 %v1572_v38, %v555_v49 }
 0x117   : > { %v974_v51 = vpop.f32.mrf.mxu1  ;;  %1398 = vmatmul.msk.f32.gmra.mxu2 %vm764_vm1, %v741_v48 }
 0x118   : > { %v975_v52 = vadd.f32 %v1702_v39, %v974_v51  ;;  %v710_v53 = vmax.f32 %v556_v50, 0.0 }
 0x11a   : > { %1162 = vst.msk [vmem:[%s1710_s19 + $0x8] sm:$0xff] %vm1160_vm2, %v975_v52  ;;  %v651_v54 = vpop.f32.mrf.mxu3  ;;  %v1067_v55 = vpop.f32.mrf.mxu2  ;;  %1367 = vmatmul.msk.f32.gmra.mxu1 %vm764_vm1, %v710_v53 }
 0x11b   : > { %v652_v56 = vadd.f32 %v1572_v38, %v651_v54  ;;  %v1068_v57 = vadd.f32 %v1702_v39, %v1067_v55 }
 0x11d   : > { %v742_v58 = vmax.f32 %v652_v56, 0.0  ;;  %1193 = vst.msk [vmem:[%s1710_s19 + $0x100] sm:$0xff] %vm1160_vm2, %v1068_v57  ;;  %v558_v59 = vpop.f32.mrf.mxu0 }
 0x11e   : > { %v559_v60 = vadd.f32 %v1572_v38, %v558_v59 }
 0x11f   : > { %v977_v61 = vpop.f32.mrf.mxu1  ;;  %1399 = vmatmul.msk.f32.gmra.mxu2 %vm764_vm1, %v742_v58 }
 0x120   : > { %v978_v62 = vadd.f32 %v1702_v39, %v977_v61  ;;  %v711_v63 = vmax.f32 %v559_v60, 0.0 }
 0x122   : > { %1163 = vst.msk [vmem:[%s1710_s19 + $0x10] sm:$0xff] %vm1160_vm2, %v978_v62  ;;  %v654_v0 = vpop.f32.mrf.mxu3  ;;  %v1070_v1 = vpop.f32.mrf.mxu2  ;;  %1368 = vmatmul.msk.f32.gmra.mxu1 %vm764_vm1, %v711_v63 }
 0x123   : > { %v655_v2 = vadd.f32 %v1572_v38, %v654_v0  ;;  %v1071_v3 = vadd.f32 %v1702_v39, %v1070_v1 }
 0x125   : > { %v743_v4 = vmax.f32 %v655_v2, 0.0  ;;  %1194 = vst.msk [vmem:[%s1710_s19 + $0x108] sm:$0xff] %vm1160_vm2, %v1071_v3  ;;  %v561_v5 = vpop.f32.mrf.mxu0 }
 0x126   : > { %v562_v6 = vadd.f32 %v1572_v38, %v561_v5 }
 0x127   : > { %v980_v7 = vpop.f32.mrf.mxu1  ;;  %1400 = vmatmul.msk.f32.gmra.mxu2 %vm764_vm1, %v743_v4 }
 0x128   : > { %v981_v8 = vadd.f32 %v1702_v39, %v980_v7  ;;  %v712_v9 = vmax.f32 %v562_v6, 0.0 }
 0x12a   : > { %1164 = vst.msk [vmem:[%s1710_s19 + $0x18] sm:$0xff] %vm1160_vm2, %v981_v8  ;;  %v657_v10 = vpop.f32.mrf.mxu3  ;;  %v1073_v11 = vpop.f32.mrf.mxu2  ;;  %1369 = vmatmul.msk.f32.gmra.mxu1 %vm764_vm1, %v712_v9 }
 0x12b   : > { %v658_v12 = vadd.f32 %v1572_v38, %v657_v10  ;;  %v1074_v13 = vadd.f32 %v1702_v39, %v1073_v11 }
 0x12d   : > { %v744_v14 = vmax.f32 %v658_v12, 0.0  ;;  %1195 = vst.msk [vmem:[%s1710_s19 + $0x110] sm:$0xff] %vm1160_vm2, %v1074_v13  ;;  %v564_v15 = vpop.f32.mrf.mxu0 }
 0x12e   : > { %v565_v16 = vadd.f32 %v1572_v38, %v564_v15 }
 0x12f   : > { %v983_v17 = vpop.f32.mrf.mxu1  ;;  %1401 = vmatmul.msk.f32.gmra.mxu2 %vm764_vm1, %v744_v14 }
 0x130   : > { %v984_v18 = vadd.f32 %v1702_v39, %v983_v17  ;;  %v713_v19 = vmax.f32 %v565_v16, 0.0 }
 0x132   : > { %1165 = vst.msk [vmem:[%s1710_s19 + $0x20] sm:$0xff] %vm1160_vm2, %v984_v18  ;;  %v660_v20 = vpop.f32.mrf.mxu3  ;;  %v1076_v21 = vpop.f32.mrf.mxu2  ;;  %1370 = vmatmul.msk.f32.gmra.mxu1 %vm764_vm1, %v713_v19 }
 0x133   : > { %v661_v22 = vadd.f32 %v1572_v38, %v660_v20  ;;  %v1077_v23 = vadd.f32 %v1702_v39, %v1076_v21 }
 0x135   : > { %v745_v24 = vmax.f32 %v661_v22, 0.0  ;;  %1196 = vst.msk [vmem:[%s1710_s19 + $0x118] sm:$0xff] %vm1160_vm2, %v1077_v23  ;;  %v567_v25 = vpop.f32.mrf.mxu0 }
 0x136   : > { %v568_v26 = vadd.f32 %v1572_v38, %v567_v25 }
 0x137   : > { %v986_v27 = vpop.f32.mrf.mxu1  ;;  %1402 = vmatmul.msk.f32.gmra.mxu2 %vm764_vm1, %v745_v24 }
 0x138   : > { %v987_v28 = vadd.f32 %v1702_v39, %v986_v27  ;;  %v714_v29 = vmax.f32 %v568_v26, 0.0 }
 0x13a   : > { %1166 = vst.msk [vmem:[%s1710_s19 + $0x28] sm:$0xff] %vm1160_vm2, %v987_v28  ;;  %v663_v30 = vpop.f32.mrf.mxu3  ;;  %v1079_v31 = vpop.f32.mrf.mxu2  ;;  %1371 = vmatmul.msk.f32.gmra.mxu1 %vm764_vm1, %v714_v29 }
 0x13b   : > { %v664_v32 = vadd.f32 %v1572_v38, %v663_v30  ;;  %v1080_v33 = vadd.f32 %v1702_v39, %v1079_v31 }
 0x13d   : > { %v746_v34 = vmax.f32 %v664_v32, 0.0  ;;  %1197 = vst.msk [vmem:[%s1710_s19 + $0x120] sm:$0xff] %vm1160_vm2, %v1080_v33  ;;  %v570_v35 = vpop.f32.mrf.mxu0 }
 0x13e   : > { %v571_v36 = vadd.f32 %v1572_v38, %v570_v35 }
 0x13f   : > { %v989_v37 = vpop.f32.mrf.mxu1  ;;  %1403 = vmatmul.msk.f32.gmra.mxu2 %vm764_vm1, %v746_v34 }
 0x140   : > { %v990_v40 = vadd.f32 %v1702_v39, %v989_v37  ;;  %v715_v41 = vmax.f32 %v571_v36, 0.0 }
 0x142   : > { %1167 = vst.msk [vmem:[%s1710_s19 + $0x30] sm:$0xff] %vm1160_vm2, %v990_v40  ;;  %v666_v42 = vpop.f32.mrf.mxu3  ;;  %v1082_v43 = vpop.f32.mrf.mxu2  ;;  %1372 = vmatmul.msk.f32.gmra.mxu1 %vm764_vm1, %v715_v41 }
 0x143   : > { %v667_v44 = vadd.f32 %v1572_v38, %v666_v42  ;;  %v1083_v45 = vadd.f32 %v1702_v39, %v1082_v43 }
 0x145   : > { %v747_v46 = vmax.f32 %v667_v44, 0.0  ;;  %1198 = vst.msk [vmem:[%s1710_s19 + $0x128] sm:$0xff] %vm1160_vm2, %v1083_v45  ;;  %v573_v47 = vpop.f32.mrf.mxu0 }
 0x146   : > { %v574_v48 = vadd.f32 %v1572_v38, %v573_v47 }
 0x147   : > { %v992_v49 = vpop.f32.mrf.mxu1  ;;  %1404 = vmatmul.msk.f32.gmra.mxu2 %vm764_vm1, %v747_v46 }
 0x148   : > { %v993_v50 = vadd.f32 %v1702_v39, %v992_v49  ;;  %v716_v51 = vmax.f32 %v574_v48, 0.0 }
 0x14a   : > { %1168 = vst.msk [vmem:[%s1710_s19 + $0x38] sm:$0xff] %vm1160_vm2, %v993_v50  ;;  %v669_v52 = vpop.f32.mrf.mxu3  ;;  %v1085_v53 = vpop.f32.mrf.mxu2  ;;  %1373 = vmatmul.msk.f32.gmra.mxu1 %vm764_vm1, %v716_v51 }
 0x14b   : > { %v670_v54 = vadd.f32 %v1572_v38, %v669_v52  ;;  %v1086_v55 = vadd.f32 %v1702_v39, %v1085_v53 }
 0x14d   : > { %v748_v56 = vmax.f32 %v670_v54, 0.0  ;;  %1199 = vst.msk [vmem:[%s1710_s19 + $0x130] sm:$0xff] %vm1160_vm2, %v1086_v55  ;;  %v576_v57 = vpop.f32.mrf.mxu0 }
 0x14e   : > { %v577_v58 = vadd.f32 %v1572_v38, %v576_v57 }
 0x14f   : > { %v995_v59 = vpop.f32.mrf.mxu1  ;;  %1405 = vmatmul.msk.f32.gmra.mxu2 %vm764_vm1, %v748_v56 }
 0x150   : > { %v996_v60 = vadd.f32 %v1702_v39, %v995_v59  ;;  %v717_v61 = vmax.f32 %v577_v58, 0.0 }
 0x152   : > { %1169 = vst.msk [vmem:[%s1710_s19 + $0x40] sm:$0xff] %vm1160_vm2, %v996_v60  ;;  %v672_v62 = vpop.f32.mrf.mxu3  ;;  %v1088_v63 = vpop.f32.mrf.mxu2  ;;  %1374 = vmatmul.msk.f32.gmra.mxu1 %vm764_vm1, %v717_v61 }
 0x153   : > { %v673_v0 = vadd.f32 %v1572_v38, %v672_v62  ;;  %v1089_v1 = vadd.f32 %v1702_v39, %v1088_v63 }
 0x155   : > { %v749_v2 = vmax.f32 %v673_v0, 0.0  ;;  %1200 = vst.msk [vmem:[%s1710_s19 + $0x138] sm:$0xff] %vm1160_vm2, %v1089_v1  ;;  %v579_v3 = vpop.f32.mrf.mxu0 }
 0x156   : > { %v580_v4 = vadd.f32 %v1572_v38, %v579_v3 }
 0x157   : > { %v998_v5 = vpop.f32.mrf.mxu1  ;;  %1406 = vmatmul.msk.f32.gmra.mxu2 %vm764_vm1, %v749_v2 }
 0x158   : > { %v999_v6 = vadd.f32 %v1702_v39, %v998_v5  ;;  %v718_v7 = vmax.f32 %v580_v4, 0.0 }
 0x15a   : > { %1170 = vst.msk [vmem:[%s1710_s19 + $0x48] sm:$0xff] %vm1160_vm2, %v999_v6  ;;  %v675_v8 = vpop.f32.mrf.mxu3  ;;  %v1091_v9 = vpop.f32.mrf.mxu2  ;;  %1375 = vmatmul.msk.f32.gmra.mxu1 %vm764_vm1, %v718_v7 }
 0x15b   : > { %v676_v10 = vadd.f32 %v1572_v38, %v675_v8  ;;  %v1092_v11 = vadd.f32 %v1702_v39, %v1091_v9 }
 0x15d   : > { %v750_v12 = vmax.f32 %v676_v10, 0.0  ;;  %1201 = vst.msk [vmem:[%s1710_s19 + $0x140] sm:$0xff] %vm1160_vm2, %v1092_v11  ;;  %v582_v13 = vpop.f32.mrf.mxu0 }
 0x15e   : > { %v583_v14 = vadd.f32 %v1572_v38, %v582_v13 }
 0x15f   : > { %v1001_v15 = vpop.f32.mrf.mxu1  ;;  %1407 = vmatmul.msk.f32.gmra.mxu2 %vm764_vm1, %v750_v12 }
 0x160   : > { %v1002_v16 = vadd.f32 %v1702_v39, %v1001_v15  ;;  %v719_v17 = vmax.f32 %v583_v14, 0.0 }
 0x162   : > { %1171 = vst.msk [vmem:[%s1710_s19 + $0x50] sm:$0xff] %vm1160_vm2, %v1002_v16  ;;  %v678_v18 = vpop.f32.mrf.mxu3  ;;  %v1094_v19 = vpop.f32.mrf.mxu2  ;;  %1376 = vmatmul.msk.f32.gmra.mxu1 %vm764_vm1, %v719_v17 }
 0x163   : > { %v679_v20 = vadd.f32 %v1572_v38, %v678_v18  ;;  %v1095_v21 = vadd.f32 %v1702_v39, %v1094_v19 }
 0x165   : > { %v751_v22 = vmax.f32 %v679_v20, 0.0  ;;  %1202 = vst.msk [vmem:[%s1710_s19 + $0x148] sm:$0xff] %vm1160_vm2, %v1095_v21  ;;  %v585_v23 = vpop.f32.mrf.mxu0 }
 0x166   : > { %v586_v24 = vadd.f32 %v1572_v38, %v585_v23 }
 0x167   : > { %v1004_v25 = vpop.f32.mrf.mxu1  ;;  %1408 = vmatmul.msk.f32.gmra.mxu2 %vm764_vm1, %v751_v22 }
 0x168   : > { %v1005_v26 = vadd.f32 %v1702_v39, %v1004_v25  ;;  %v720_v27 = vmax.f32 %v586_v24, 0.0 }
 0x16a   : > { %1172 = vst.msk [vmem:[%s1710_s19 + $0x58] sm:$0xff] %vm1160_vm2, %v1005_v26  ;;  %v681_v28 = vpop.f32.mrf.mxu3  ;;  %v1097_v29 = vpop.f32.mrf.mxu2  ;;  %1377 = vmatmul.msk.f32.gmra.mxu1 %vm764_vm1, %v720_v27 }
 0x16b   : > { %v682_v30 = vadd.f32 %v1572_v38, %v681_v28  ;;  %v1098_v31 = vadd.f32 %v1702_v39, %v1097_v29 }
 0x16d   : > { %v752_v32 = vmax.f32 %v682_v30, 0.0  ;;  %1203 = vst.msk [vmem:[%s1710_s19 + $0x150] sm:$0xff] %vm1160_vm2, %v1098_v31  ;;  %v588_v33 = vpop.f32.mrf.mxu0 }
 0x16e   : > { %v589_v34 = vadd.f32 %v1572_v38, %v588_v33 }
 0x16f   : > { %v1007_v35 = vpop.f32.mrf.mxu1  ;;  %1409 = vmatmul.msk.f32.gmra.mxu2 %vm764_vm1, %v752_v32 }
 0x170   : > { %v1008_v36 = vadd.f32 %v1702_v39, %v1007_v35  ;;  %v721_v37 = vmax.f32 %v589_v34, 0.0 }
 0x172   : > { %1173 = vst.msk [vmem:[%s1710_s19 + $0x60] sm:$0xff] %vm1160_vm2, %v1008_v36  ;;  %v684_v40 = vpop.f32.mrf.mxu3  ;;  %v1100_v41 = vpop.f32.mrf.mxu2  ;;  %1378 = vmatmul.msk.f32.gmra.mxu1 %vm764_vm1, %v721_v37 }
 0x173   : > { %v685_v42 = vadd.f32 %v1572_v38, %v684_v40  ;;  %v1101_v43 = vadd.f32 %v1702_v39, %v1100_v41 }
 0x175   : > { %v753_v44 = vmax.f32 %v685_v42, 0.0  ;;  %1204 = vst.msk [vmem:[%s1710_s19 + $0x158] sm:$0xff] %vm1160_vm2, %v1101_v43  ;;  %v591_v45 = vpop.f32.mrf.mxu0 }
 0x176   : > { %v592_v46 = vadd.f32 %v1572_v38, %v591_v45 }
 0x177   : > { %v1010_v47 = vpop.f32.mrf.mxu1  ;;  %1410 = vmatmul.msk.f32.gmra.mxu2 %vm764_vm1, %v753_v44 }
 0x178   : > { %v1011_v48 = vadd.f32 %v1702_v39, %v1010_v47  ;;  %v722_v49 = vmax.f32 %v592_v46, 0.0 }
 0x17a   : > { %1174 = vst.msk [vmem:[%s1710_s19 + $0x68] sm:$0xff] %vm1160_vm2, %v1011_v48  ;;  %v687_v50 = vpop.f32.mrf.mxu3  ;;  %v1103_v51 = vpop.f32.mrf.mxu2  ;;  %1379 = vmatmul.msk.f32.gmra.mxu1 %vm764_vm1, %v722_v49 }
 0x17b   : > { %v688_v52 = vadd.f32 %v1572_v38, %v687_v50  ;;  %v1104_v53 = vadd.f32 %v1702_v39, %v1103_v51 }
 0x17d   : > { %v754_v54 = vmax.f32 %v688_v52, 0.0  ;;  %1205 = vst.msk [vmem:[%s1710_s19 + $0x160] sm:$0xff] %vm1160_vm2, %v1104_v53  ;;  %v594_v55 = vpop.f32.mrf.mxu0 }
 0x17e   : > { %v595_v56 = vadd.f32 %v1572_v38, %v594_v55 }
 0x17f   : > { %v1013_v57 = vpop.f32.mrf.mxu1  ;;  %1411 = vmatmul.msk.f32.gmra.mxu2 %vm764_vm1, %v754_v54 }
 0x180   : > { %v1014_v58 = vadd.f32 %v1702_v39, %v1013_v57  ;;  %v723_v59 = vmax.f32 %v595_v56, 0.0 }
 0x182   : > { %1175 = vst.msk [vmem:[%s1710_s19 + $0x70] sm:$0xff] %vm1160_vm2, %v1014_v58  ;;  %v690_v60 = vpop.f32.mrf.mxu3  ;;  %v1106_v61 = vpop.f32.mrf.mxu2  ;;  %1380 = vmatmul.msk.f32.gmra.mxu1 %vm764_vm1, %v723_v59 }
 0x183   : > { %v691_v62 = vadd.f32 %v1572_v38, %v690_v60  ;;  %v1107_v63 = vadd.f32 %v1702_v39, %v1106_v61 }
 0x185   : > { %v755_v0 = vmax.f32 %v691_v62, 0.0  ;;  %1206 = vst.msk [vmem:[%s1710_s19 + $0x168] sm:$0xff] %vm1160_vm2, %v1107_v63  ;;  %v597_v1 = vpop.f32.mrf.mxu0 }
 0x186   : > { %v598_v2 = vadd.f32 %v1572_v38, %v597_v1 }
 0x187   : > { %v1016_v3 = vpop.f32.mrf.mxu1  ;;  %1412 = vmatmul.msk.f32.gmra.mxu2 %vm764_vm1, %v755_v0 }
 0x188   : > { %v1017_v4 = vadd.f32 %v1702_v39, %v1016_v3  ;;  %v724_v5 = vmax.f32 %v598_v2, 0.0 }
 0x18a   : > { %1176 = vst.msk [vmem:[%s1710_s19 + $0x78] sm:$0xff] %vm1160_vm2, %v1017_v4  ;;  %v1109_v6 = vpop.f32.mrf.mxu2  ;;  %1381 = vmatmul.msk.f32.gmra.mxu1 %vm764_vm1, %v724_v5 }
 0x18b   : > { %v1110_v7 = vadd.f32 %v1702_v39, %v1109_v6 }
 0x18d   : > { %1207 = vst.msk [vmem:[%s1710_s19 + $0x170] sm:$0xff] %vm1160_vm2, %v1110_v7 }
 0x18f   : > { %v1019_v8 = vpop.f32.mrf.mxu1 }
 0x190   : > { %v1020_v38 = vadd.f32 %v1702_v39, %v1019_v8 }
 0x192   : > { %1177 = vst.msk [vmem:[%s1710_s19 + $0x80] sm:$0xff] %vm1160_vm2, %v1020_v38  ;;  %v1112_v9 = vpop.f32.mrf.mxu2 }
 0x193   : > { %v1113_v10 = vadd.f32 %v1702_v39, %v1112_v9 }
 0x195   : > { %1208 = vst.msk [vmem:[%s1710_s19 + $0x178] sm:$0xff] %vm1160_vm2, %v1113_v10 }
 0x197   : > { %v1022_v11 = vpop.f32.mrf.mxu1 }
 0x198   : > { %v1023_v12 = vadd.f32 %v1702_v39, %v1022_v11 }
 0x19a   : > { %1178 = vst.msk [vmem:[%s1710_s19 + $0x88] sm:$0xff] %vm1160_vm2, %v1023_v12  ;;  %v1115_v13 = vpop.f32.mrf.mxu2 }
 0x19b   : > { %v1116_v14 = vadd.f32 %v1702_v39, %v1115_v13 }
 0x19d   : > { %1209 = vst.msk [vmem:[%s1710_s19 + $0x180] sm:$0xff] %vm1160_vm2, %v1116_v14 }
 0x19f   : > { %v1025_v15 = vpop.f32.mrf.mxu1 }
 0x1a0   : > { %v1026_v16 = vadd.f32 %v1702_v39, %v1025_v15 }
 0x1a2   : > { %1179 = vst.msk [vmem:[%s1710_s19 + $0x90] sm:$0xff] %vm1160_vm2, %v1026_v16  ;;  %v1118_v17 = vpop.f32.mrf.mxu2 }
 0x1a3   : > { %v1119_v18 = vadd.f32 %v1702_v39, %v1118_v17 }
 0x1a5   : > { %1210 = vst.msk [vmem:[%s1710_s19 + $0x188] sm:$0xff] %vm1160_vm2, %v1119_v18 }
 0x1a7   : > { %v1028_v19 = vpop.f32.mrf.mxu1 }
 0x1a8   : > { %v1029_v20 = vadd.f32 %v1702_v39, %v1028_v19 }
 0x1aa   : > { %1180 = vst.msk [vmem:[%s1710_s19 + $0x98] sm:$0xff] %vm1160_vm2, %v1029_v20  ;;  %v1121_v21 = vpop.f32.mrf.mxu2 }
 0x1ab   : > { %v1122_v22 = vadd.f32 %v1702_v39, %v1121_v21 }
 0x1ad   : > { %1211 = vst.msk [vmem:[%s1710_s19 + $0x190] sm:$0xff] %vm1160_vm2, %v1122_v22 }
 0x1af   : > { %v1031_v23 = vpop.f32.mrf.mxu1 }
 0x1b0   : > { %v1032_v24 = vadd.f32 %v1702_v39, %v1031_v23 }
 0x1b2   : > { %1181 = vst.msk [vmem:[%s1710_s19 + $0xa0] sm:$0xff] %vm1160_vm2, %v1032_v24  ;;  %v1124_v25 = vpop.f32.mrf.mxu2 }
 0x1b3   : > { %v1125_v26 = vadd.f32 %v1702_v39, %v1124_v25 }
 0x1b5   : > { %1212 = vst.msk [vmem:[%s1710_s19 + $0x198] sm:$0xff] %vm1160_vm2, %v1125_v26 }
 0x1b7   : > { %v1034_v27 = vpop.f32.mrf.mxu1 }
 0x1b8   : > { %v1035_v28 = vadd.f32 %v1702_v39, %v1034_v27 }
 0x1ba   : > { %1182 = vst.msk [vmem:[%s1710_s19 + $0xa8] sm:$0xff] %vm1160_vm2, %v1035_v28  ;;  %v1127_v29 = vpop.f32.mrf.mxu2 }
 0x1bb   : > { %v1128_v30 = vadd.f32 %v1702_v39, %v1127_v29 }
 0x1bd   : > { %1213 = vst.msk [vmem:[%s1710_s19 + $0x1a0] sm:$0xff] %vm1160_vm2, %v1128_v30 }
 0x1bf   : > { %v1037_v31 = vpop.f32.mrf.mxu1 }
 0x1c0   : > { %v1038_v32 = vadd.f32 %v1702_v39, %v1037_v31 }
 0x1c2   : > { %1183 = vst.msk [vmem:[%s1710_s19 + $0xb0] sm:$0xff] %vm1160_vm2, %v1038_v32  ;;  %v1130_v33 = vpop.f32.mrf.mxu2 }
 0x1c3   : > { %v1131_v34 = vadd.f32 %v1702_v39, %v1130_v33 }
 0x1c5   : > { %1214 = vst.msk [vmem:[%s1710_s19 + $0x1a8] sm:$0xff] %vm1160_vm2, %v1131_v34 }
 0x1c7   : > { %v1040_v35 = vpop.f32.mrf.mxu1 }
 0x1c8   : > { %v1041_v36 = vadd.f32 %v1702_v39, %v1040_v35 }
 0x1ca   : > { %1184 = vst.msk [vmem:[%s1710_s19 + $0xb8] sm:$0xff] %vm1160_vm2, %v1041_v36  ;;  %v1133_v37 = vpop.f32.mrf.mxu2 }
 0x1cb   : > { %v1134_v40 = vadd.f32 %v1702_v39, %v1133_v37 }
 0x1cd   : > { %1215 = vst.msk [vmem:[%s1710_s19 + $0x1b0] sm:$0xff] %vm1160_vm2, %v1134_v40 }
 0x1cf   : > { %v1043_v41 = vpop.f32.mrf.mxu1 }
 0x1d0   : > { %v1044_v42 = vadd.f32 %v1702_v39, %v1043_v41 }
 0x1d2   : > { %1185 = vst.msk [vmem:[%s1710_s19 + $0xc0] sm:$0xff] %vm1160_vm2, %v1044_v42  ;;  %v1136_v43 = vpop.f32.mrf.mxu2 }
 0x1d3   : > { %v1137_v44 = vadd.f32 %v1702_v39, %v1136_v43 }
 0x1d5   : > { %1216 = vst.msk [vmem:[%s1710_s19 + $0x1b8] sm:$0xff] %vm1160_vm2, %v1137_v44 }
 0x1d7   : > { %v1046_v45 = vpop.f32.mrf.mxu1 }
 0x1d8   : > { %v1047_v46 = vadd.f32 %v1702_v39, %v1046_v45 }
 0x1da   : > { %1186 = vst.msk [vmem:[%s1710_s19 + $0xc8] sm:$0xff] %vm1160_vm2, %v1047_v46  ;;  %v1139_v47 = vpop.f32.mrf.mxu2 }
 0x1db   : > { %v1140_v48 = vadd.f32 %v1702_v39, %v1139_v47 }
 0x1dd   : > { %1217 = vst.msk [vmem:[%s1710_s19 + $0x1c0] sm:$0xff] %vm1160_vm2, %v1140_v48 }
 0x1df   : > { %v1049_v49 = vpop.f32.mrf.mxu1 }
 0x1e0   : > { %v1050_v50 = vadd.f32 %v1702_v39, %v1049_v49 }
 0x1e2   : > { %1187 = vst.msk [vmem:[%s1710_s19 + $0xd0] sm:$0xff] %vm1160_vm2, %v1050_v50  ;;  %v1142_v51 = vpop.f32.mrf.mxu2 }
 0x1e3   : > { %v1143_v52 = vadd.f32 %v1702_v39, %v1142_v51 }
 0x1e5   : > { %1218 = vst.msk [vmem:[%s1710_s19 + $0x1c8] sm:$0xff] %vm1160_vm2, %v1143_v52 }
 0x1e7   : > { %v1052_v53 = vpop.f32.mrf.mxu1 }
 0x1e8   : > { %v1053_v54 = vadd.f32 %v1702_v39, %v1052_v53 }
 0x1ea   : > { %1188 = vst.msk [vmem:[%s1710_s19 + $0xd8] sm:$0xff] %vm1160_vm2, %v1053_v54  ;;  %v1145_v55 = vpop.f32.mrf.mxu2 }
 0x1eb   : > { %v1146_v56 = vadd.f32 %v1702_v39, %v1145_v55 }
 0x1ed   : > { %1219 = vst.msk [vmem:[%s1710_s19 + $0x1d0] sm:$0xff] %vm1160_vm2, %v1146_v56 }
 0x1ef   : > { %v1055_v57 = vpop.f32.mrf.mxu1 }
 0x1f0   : > { %v1056_v58 = vadd.f32 %v1702_v39, %v1055_v57 }
 0x1f2   : > { %1189 = vst.msk [vmem:[%s1710_s19 + $0xe0] sm:$0xff] %vm1160_vm2, %v1056_v58  ;;  %v1148_v59 = vpop.f32.mrf.mxu2 }
 0x1f3   : > { %v1149_v60 = vadd.f32 %v1702_v39, %v1148_v59 }
 0x1f5   : > { %1220 = vst.msk [vmem:[%s1710_s19 + $0x1d8] sm:$0xff] %vm1160_vm2, %v1149_v60 }
 0x1f7   : > { %v1058_v61 = vpop.f32.mrf.mxu1 }
 0x1f8   : > { %v1059_v62 = vadd.f32 %v1702_v39, %v1058_v61 }
 0x1fa   : > { %1190 = vst.msk [vmem:[%s1710_s19 + $0xe8] sm:$0xff] %vm1160_vm2, %v1059_v62  ;;  %v1151_v63 = vpop.f32.mrf.mxu2 }
 0x1fb   : > { %v1152_v0 = vadd.f32 %v1702_v39, %v1151_v63 }
 0x1fd   : > { %1221 = vst.msk [vmem:[%s1710_s19 + $0x1e0] sm:$0xff] %vm1160_vm2, %v1152_v0 }
 0x1ff   : > { %v1061_v1 = vpop.f32.mrf.mxu1 }
 0x200   : > { %v1062_v2 = vadd.f32 %v1702_v39, %v1061_v1 }
 0x202   : > { %1191 = vst.msk [vmem:[%s1710_s19 + $0xf0] sm:$0xff] %vm1160_vm2, %v1062_v2  ;;  %v1154_v3 = vpop.f32.mrf.mxu2 }
 0x203   : > { %v1155_v4 = vadd.f32 %v1702_v39, %v1154_v3 }
 0x205   : > { %1222 = vst.msk [vmem:[%s1710_s19 + $0x1e8] sm:$0xff] %vm1160_vm2, %v1155_v4 }
 0x207   : > { %v1064_v5 = vpop.f32.mrf.mxu1 }
 0x208   : > { %v1065_v6 = vadd.f32 %v1702_v39, %v1064_v5 }
 0x20a   : > { %1192 = vst.msk [vmem:[%s1710_s19 + $0xf8] sm:$0xff] %vm1160_vm2, %v1065_v6  ;;  %v1157_v7 = vpop.f32.mrf.mxu2 }
 0x20b   : > { %v1158_v8 = vadd.f32 %v1702_v39, %v1157_v7 }
 0x20d   : > { %1223 = vst.msk [vmem:[%s1710_s19 + $0x1f0] sm:$0xff] %vm1160_vm2, %v1158_v8 }
 0x20e PF: > { %s15_s18 = sadd.s32 1, %s1437_s18  }
 0x20f   : > { %p12_p4 = scmp.ge.s32.totalorder %s15_s18, 4  }
 0x211   :  { %14 = sbr.rel (!%p12_p4) target bundleno = 1 (0x1), region = 70 }

</bundles_post_ra>
